<compile_context>
chip_gen: v7x
topology: tpu7x:2x2x1
jax: 0.10.0
libtpu: 0.0.40
codegen_flags: <defaults>
</compile_context>

<pallas_src>
import functools

import numpy as np
import jax
import jax.numpy as jnp
from jax.experimental import pallas as pl
from jax.experimental.pallas import tpu as pltpu

# hyperparameters consistent with the module's __init__
D_MODEL = 32
NHEAD = 4          # only needed by the reference: the one-hot row-0 attention makes
                   # the head split irrelevant inside the kernel (concat of v_h[0] == v[0])
SEQ_LEN = 8
N_LAYERS = 3
DIM_FF = 64
EPS = 1e-5
BATCH = 2

# per-layer bias / LayerNorm slab row indices (lvecs: (N_LAYERS, 8, 128))
LV_BVO, LV_G1, LV_BE1, LV_B1, LV_B2, LV_G2, LV_BE2 = range(7)

assert D_MODEL <= 128 and DIM_FF <= 128, "slab packing assumes vectors fit one lane tile"


def _layer_norm(x, gamma, beta):
    # Parallel-statistics form: two independent reductions (co-issue on the XLUs),
    # var = E[x^2] - mean^2.  Minor fp reassociation vs torch (accepted by review).
    d = x.shape[-1]
    inv_d = 1.0 / d
    s1 = jnp.sum(x, axis=-1, keepdims=True)
    s2 = jnp.sum(x * x, axis=-1, keepdims=True)
    mean = s1 * inv_d
    var = s2 * inv_d - mean * mean
    return (x - mean) * jax.lax.rsqrt(var + EPS) * gamma + beta


def fused_decoder_kernel(n_batch, x_ref, gv_ref, w_ref, lv_ref, o_ref):
    # x_ref : (L*N, E)  activation slab; row i <-> (l = i // N, n = i % N)
    # gv_ref: (GV_ROWS, 128) global slab:
    #           rows [0, L*N)      tiled positional table  (row i = P[i % N])
    #           row  L*N           norm_input gamma
    #           row  L*N + 1       norm_input beta
    # w_ref : (NL, 2E+F, max(E,F)) weight slab per layer (y = x @ W convention):
    #           rows [0, E)        Wvo = Wv^T @ Wo^T   (cols [0, E))
    #           rows [E, 2E)       W1^T                (cols [0, F))
    #           rows [2E, 2E+F)    W2^T                (cols [0, E))
    # lv_ref: (NL, 8, 128) per-layer bias / LayerNorm slab (rows LV_*)
    LN, E = x_ref.shape
    N = n_batch
    F = w_ref.shape[1] - 2 * E
    NL = w_ref.shape[0]

    pe   = gv_ref[0:LN, 0:E]               # (LN, E) tiled positional table
    g_in = gv_ref[LN:LN + 1, 0:E]          # (1, E)
    b_in = gv_ref[LN + 1:LN + 2, 0:E]      # (1, E)

    x = x_ref[...].astype(jnp.float32)     # (LN, E), 2 vregs
    # input LayerNorm + positional "encoding" (table added over the batch index,
    # pre-tiled at init so no in-kernel broadcast is needed).
    x = _layer_norm(x, g_in, b_in) + pe
    # TODO(synk): dropout (p=0.1) is identity in inference mode; not implemented.

    # Seq-broadcast matrix: bcast[i, j] = 1 if j == i % N.  Built once; the
    # broadcast of the (N, E) attention output over the sequence axis is then a
    # tiny MXU matmul instead of a sublane relayout.
    rows = jax.lax.broadcasted_iota(jnp.int32, (LN, N), 0)
    cols = jax.lax.broadcasted_iota(jnp.int32, (LN, N), 1)
    bcast = (rows % N == cols).astype(jnp.float32)        # (LN, N)

    # static (unrolled) loop over layers: everything stays resident in VMEM/vregs.
    for l in range(NL):
        lv = lv_ref[l]                                    # (8, 128) = 1 vreg
        bvo = lv[LV_BVO:LV_BVO + 1, 0:E]
        g1  = lv[LV_G1:LV_G1 + 1, 0:E]
        be1 = lv[LV_BE1:LV_BE1 + 1, 0:E]
        b1  = lv[LV_B1:LV_B1 + 1, 0:F]
        b2  = lv[LV_B2:LV_B2 + 1, 0:E]
        g2  = lv[LV_G2:LV_G2 + 1, 0:E]
        be2 = lv[LV_BE2:LV_BE2 + 1, 0:E]

        wvo = w_ref[l, 0:E, 0:E]                          # (E, E)
        w1  = w_ref[l, E:2 * E, 0:F]                      # (E, F)
        w2  = w_ref[l, 2 * E:2 * E + F, 0:E]              # (F, E)

        # --- self-attention block, reduced to its live value ---
        # causal mask => softmax row 0 is one-hot on key 0 =>
        #   attn_output[0] = (x[0] @ Wv^T + bv) @ Wo^T + bo = x[0] @ Wvo + bvo   (N, E)
        x0 = x[0:N, :]                                    # rows of seq position 0
        sa = jnp.dot(x0, wvo, preferred_element_type=jnp.float32) + bvo   # (N, E)
        sa_t = jnp.dot(bcast, sa, preferred_element_type=jnp.float32)     # (LN, E)

        # residual broadcast over the sequence axis + norm1
        x = _layer_norm(x + sa_t, g1, be1)

        # --- feed forward (directly on the 2-D slab, no reshapes) ---
        h = jnp.dot(x, w1, preferred_element_type=jnp.float32) + b1
        h = jnp.maximum(h, 0.0)                           # relu
        ff = jnp.dot(h, w2, preferred_element_type=jnp.float32) + b2

        x = _layer_norm(x + ff, g2, be2)

    # Output last dim is E=32 (<128 lanes) -> masked stores; 2 KiB total, negligible,
    # and it avoids any padding / relayout work (per review).
    o_ref[...] = x.astype(o_ref.dtype)


def _vmem_spec():
    return pl.BlockSpec(memory_space=pltpu.MemorySpace.VMEM)


@jax.jit
def custom_transformer_decoder_forward(tgt, params):
    """tgt: (L, N, E) in the module's batch_first=False convention."""
    L, N, E = tgt.shape
    LN = L * N
    assert params['gvecs'].shape[0] >= LN + 2, "gvecs slab built for a different (L, N)"
    # contiguous (L, N, E) -> (L*N, E) merge: a free view, no relayout / transpose.
    x2d = tgt.reshape(LN, E)
    out2d = pl.pallas_call(
        functools.partial(fused_decoder_kernel, N),
        out_shape=jax.ShapeDtypeStruct((LN, E), jnp.float32),
        in_specs=[_vmem_spec()] * 4,
        out_specs=_vmem_spec(),
    )(x2d, params['gvecs'], params['wslab'], params['lvecs'])
    return out2d.reshape(L, N, E)


def init_params(key, seq_len=SEQ_LEN, batch=BATCH):
    """Returns (packed kernel params, unpacked reference params).

    All weights are stored in the (in_features, out_features) convention,
    i.e. y = x @ W + b (the transpose of torch's Linear weight layout).
    """
    E, F, NL = D_MODEL, DIM_FF, N_LAYERS
    L, N = seq_len, batch
    LN = L * N

    # PositionalEncoding table P of shape (max_len=seq_length, d_model)
    pos = np.arange(L, dtype=np.float32).reshape(-1, 1)
    div = np.power(10000.0, np.arange(0, E, 2, dtype=np.float32) / E)
    ang = pos / div
    P = np.zeros((L, E), dtype=np.float32)
    P[:, 0::2] = np.sin(ang)
    P[:, 1::2] = np.cos(ang)

    def rnd(k, shape, scale):
        return np.asarray(scale * jax.random.normal(k, shape, jnp.float32))

    k_in, k_layers = jax.random.split(key)
    kg = jax.random.split(k_in, 2)
    g_in = 1.0 + rnd(kg[0], (E,), 0.05)      # norm_input gamma
    b_in = rnd(kg[1], (E,), 0.02)            # norm_input beta

    # --- packed global slab: tiled PE (over the batch index) + input LayerNorm ---
    gv_rows = ((LN + 2 + 7) // 8) * 8
    gvecs = np.zeros((gv_rows, 128), np.float32)
    gvecs[:LN, :E] = np.tile(P[:N], (L, 1))  # row i = P[i % N]
    gvecs[LN, :E] = g_in
    gvecs[LN + 1, :E] = b_in

    # --- packed weight slab (sublane-packed, all slices start at lane 0) ---
    w_rows, w_cols = 2 * E + F, max(E, F)
    wslab = np.zeros((NL, w_rows, w_cols), np.float32)
    lvecs = np.zeros((NL, 8, 128), np.float32)

    ref = {'P': jnp.asarray(P), 'g_in': jnp.asarray(g_in), 'b_in': jnp.asarray(b_in),
           'wq': [], 'bq': [], 'wk': [], 'bk': [], 'wv': [], 'bv': [], 'wo': [], 'bo': [],
           'w1': [], 'b1': [], 'w2': [], 'b2': [],
           'g1': [], 'be1': [], 'g2': [], 'be2': []}

    lkeys = jax.random.split(k_layers, NL)
    for li in range(NL):
        ks = jax.random.split(lkeys[li], 16)
        wq = rnd(ks[0], (E, E), 0.05);  bq = rnd(ks[1], (E,), 0.02)
        wk = rnd(ks[2], (E, E), 0.05);  bk = rnd(ks[3], (E,), 0.02)
        wv = rnd(ks[4], (E, E), 0.05);  bv = rnd(ks[5], (E,), 0.02)
        wo = rnd(ks[6], (E, E), 0.05);  bo = rnd(ks[7], (E,), 0.02)
        w1 = rnd(ks[8], (E, F), 0.05);  b1 = rnd(ks[9], (F,), 0.02)
        w2 = rnd(ks[10], (F, E), 0.05); b2 = rnd(ks[11], (E,), 0.02)
        g1 = 1.0 + rnd(ks[12], (E,), 0.05);  be1 = rnd(ks[13], (E,), 0.02)
        g2 = 1.0 + rnd(ks[14], (E,), 0.05);  be2 = rnd(ks[15], (E,), 0.02)

        for name, val in (('wq', wq), ('bq', bq), ('wk', wk), ('bk', bk),
                          ('wv', wv), ('bv', bv), ('wo', wo), ('bo', bo),
                          ('w1', w1), ('b1', b1), ('w2', w2), ('b2', b2),
                          ('g1', g1), ('be1', be1), ('g2', g2), ('be2', be2)):
            ref[name].append(jnp.asarray(val))

        # Fold value in-projection with out_proj (row-0 attention is one-hot on key 0).
        wvo = wv @ wo
        bvo = bv @ wo + bo

        wslab[li, 0:E, 0:E] = wvo
        wslab[li, E:2 * E, 0:F] = w1
        wslab[li, 2 * E:2 * E + F, 0:E] = w2

        lvecs[li, LV_BVO, :E] = bvo
        lvecs[li, LV_G1, :E] = g1
        lvecs[li, LV_BE1, :E] = be1
        lvecs[li, LV_B1, :F] = b1
        lvecs[li, LV_B2, :E] = b2
        lvecs[li, LV_G2, :E] = g2
        lvecs[li, LV_BE2, :E] = be2

    params = {'gvecs': jnp.asarray(gvecs),
              'wslab': jnp.asarray(wslab),
              'lvecs': jnp.asarray(lvecs)}
    return params, ref


def reference_forward(tgt, ref):
    """Faithful pure-JAX port of the torch module (full multi-head softmax attention,
    no fusions) used to validate the kernel, including the PE-over-batch behaviour
    and the one-hot row-0 attention reduction."""
    L, N, E = tgt.shape
    H, dh = NHEAD, E // NHEAD
    pr = jax.lax.Precision.HIGHEST

    tril = np.tril(np.ones((L, L), np.float32))
    mask = jnp.asarray(np.where(tril == 0.0, -np.inf, 0.0).astype(np.float32))

    def ln(x, g, b):
        m = jnp.mean(x, -1, keepdims=True)
        v = jnp.mean(jnp.square(x - m), -1, keepdims=True)
        return (x - m) / jnp.sqrt(v + EPS) * g + b

    x = ln(tgt, ref['g_in'], ref['b_in'])
    x = x + ref['P'][None, :N, :]                     # added over the batch index
    for l in range(N_LAYERS):
        q = jnp.einsum('lne,ef->lnf', x, ref['wq'][l], precision=pr) + ref['bq'][l]
        k = jnp.einsum('lne,ef->lnf', x, ref['wk'][l], precision=pr) + ref['bk'][l]
        v = jnp.einsum('lne,ef->lnf', x, ref['wv'][l], precision=pr) + ref['bv'][l]
        qh = q.reshape(L, N, H, dh)
        kh = k.reshape(L, N, H, dh)
        vh = v.reshape(L, N, H, dh)
        scores = jnp.einsum('lnhd,mnhd->nhlm', qh, kh, precision=pr) / np.sqrt(dh)
        scores = scores + mask[None, None, :, :]
        w = jax.nn.softmax(scores, axis=-1)
        ctx = jnp.einsum('nhlm,mnhd->lnhd', w, vh, precision=pr).reshape(L, N, E)
        attn = jnp.einsum('lne,ef->lnf', ctx, ref['wo'][l], precision=pr) + ref['bo'][l]
        sa = attn[0]                                  # the layer keeps seq position 0 only
        x = ln(x + sa[None, :, :], ref['g1'][l], ref['be1'][l])
        h = jnp.maximum(jnp.einsum('lne,ef->lnf', x, ref['w1'][l], precision=pr)
                        + ref['b1'][l], 0.0)
        ff = jnp.einsum('lnf,fe->lne', h, ref['w2'][l], precision=pr) + ref['b2'][l]
        x = ln(x + ff, ref['g2'][l], ref['be2'][l])
    return x


if __name__ == "__main__":
    key = jax.random.PRNGKey(0)
    pkey, xkey = jax.random.split(key)
    params, ref = init_params(pkey)

    # tgt: (seq_len, batch, d_model) — PyTorch batch_first=False convention
    tgt = jax.random.normal(xkey, (SEQ_LEN, BATCH, D_MODEL), jnp.float32)

    out = custom_transformer_decoder_forward(tgt, params)
    jax.block_until_ready(out)

    assert out.shape == (SEQ_LEN, BATCH, D_MODEL)
    assert bool(jnp.all(jnp.isfinite(out)))

    # Correctness check against the faithful (unfused, full-attention) reference.
    # Tolerance is loose enough to absorb MXU f32 pass-count / fp-reassociation
    # differences; any real layout/packing/broadcast bug gives O(0.1+) errors.
    expected = reference_forward(tgt, ref)
    max_err = float(jnp.max(jnp.abs(out - expected)))
    assert max_err < 2e-2, f"kernel mismatch vs reference: max abs err = {max_err}"

    print("KERNEL_OK")
</pallas_src>

<mosaic_0001>
module attributes {stable_mosaic.version = 11 : i64} {
  func.func @fused_decoder_kernel(%arg0: memref<16x32xf32, #tpu.memory_space<vmem>>, %arg1: memref<24x128xf32, #tpu.memory_space<vmem>>, %arg2: memref<3x128x64xf32, #tpu.memory_space<vmem>>, %arg3: memref<3x8x128xf32, #tpu.memory_space<vmem>>, %arg4: memref<16x32xf32, #tpu.memory_space<vmem>>) attributes {dimension_semantics = [], scalar_prefetch = 0 : i64, scratch_operands = 0 : i64, tpu.core_type = #tpu.core_type<tc>} {
    %c0 = arith.constant 0 : index
    %c0_0 = arith.constant 0 : index
    %0 = vector.load %arg1[%c0, %c0_0] : memref<24x128xf32, #tpu.memory_space<vmem>>, vector<16x32xf32>
    %c16 = arith.constant 16 : index
    %c0_1 = arith.constant 0 : index
    %1 = vector.load %arg1[%c16, %c0_1] : memref<24x128xf32, #tpu.memory_space<vmem>>, vector<1x32xf32>
    %c17 = arith.constant 17 : index
    %c0_2 = arith.constant 0 : index
    %2 = vector.load %arg1[%c17, %c0_2] : memref<24x128xf32, #tpu.memory_space<vmem>>, vector<1x32xf32>
    %c0_3 = arith.constant 0 : index
    %c0_4 = arith.constant 0 : index
    %3 = vector.load %arg0[%c0_3, %c0_4] : memref<16x32xf32, #tpu.memory_space<vmem>>, vector<16x32xf32>
    %cst = arith.constant dense<0.000000e+00> : vector<16xf32>
    %4 = vector.multi_reduction <add>, %3, %cst [1] : vector<16x32xf32> to vector<16xf32>
    %5 = vector.shape_cast %4 : vector<16xf32> to vector<16x1xf32>
    %6 = arith.mulf %3, %3 : vector<16x32xf32>
    %cst_5 = arith.constant dense<0.000000e+00> : vector<16xf32>
    %7 = vector.multi_reduction <add>, %6, %cst_5 [1] : vector<16x32xf32> to vector<16xf32>
    %8 = vector.shape_cast %7 : vector<16xf32> to vector<16x1xf32>
    %cst_6 = arith.constant 3.125000e-02 : f32
    %9 = vector.broadcast %cst_6 : f32 to vector<16x1xf32>
    %10 = arith.mulf %5, %9 : vector<16x1xf32>
    %cst_7 = arith.constant 3.125000e-02 : f32
    %11 = vector.broadcast %cst_7 : f32 to vector<16x1xf32>
    %12 = arith.mulf %8, %11 : vector<16x1xf32>
    %13 = arith.mulf %10, %10 : vector<16x1xf32>
    %14 = arith.subf %12, %13 : vector<16x1xf32>
    %15 = vector.broadcast %10 : vector<16x1xf32> to vector<16x32xf32>
    %16 = arith.subf %3, %15 : vector<16x32xf32>
    %cst_8 = arith.constant 9.99999974E-6 : f32
    %17 = vector.broadcast %cst_8 : f32 to vector<16x1xf32>
    %18 = arith.addf %14, %17 : vector<16x1xf32>
    %19 = math.rsqrt %18 : vector<16x1xf32>
    %20 = vector.broadcast %19 : vector<16x1xf32> to vector<16x32xf32>
    %21 = arith.mulf %16, %20 : vector<16x32xf32>
    %22 = vector.broadcast %1 : vector<1x32xf32> to vector<16x32xf32>
    %23 = arith.mulf %21, %22 : vector<16x32xf32>
    %24 = vector.broadcast %2 : vector<1x32xf32> to vector<16x32xf32>
    %25 = arith.addf %23, %24 : vector<16x32xf32>
    %26 = arith.addf %25, %0 : vector<16x32xf32>
    %27 = tpu.iota {dimensions = array<i32: 0>} : vector<16x2xi32>
    %28 = tpu.iota {dimensions = array<i32: 1>} : vector<16x2xi32>
    %c2_i32 = arith.constant 2 : i32
    %c0_i32 = arith.constant 0 : i32
    %29 = arith.cmpi eq, %c2_i32, %c0_i32 : i32
    %c1_i32 = arith.constant 1 : i32
    %30 = arith.select %29, %c1_i32, %c2_i32 : i32
    %31 = vector.broadcast %30 : i32 to vector<16x2xi32>
    %32 = arith.remsi %27, %31 : vector<16x2xi32>
    %c0_i32_9 = arith.constant 0 : i32
    %33 = vector.broadcast %c0_i32_9 : i32 to vector<16x2xi32>
    %34 = arith.cmpi ne, %32, %33 : vector<16x2xi32>
    %c0_i32_10 = arith.constant 0 : i32
    %35 = vector.broadcast %c0_i32_10 : i32 to vector<16x2xi32>
    %36 = arith.cmpi slt, %32, %35 : vector<16x2xi32>
    %c0_i32_11 = arith.constant 0 : i32
    %37 = arith.cmpi slt, %30, %c0_i32_11 : i32
    %38 = vector.broadcast %37 : i1 to vector<16x2xi1>
    %39 = vector.broadcast %38 : vector<16x2xi1> to vector<16x2xi1>
    %40 = arith.xori %36, %39 : vector<16x2xi1>
    %41 = arith.andi %40, %34 : vector<16x2xi1>
    %42 = vector.broadcast %30 : i32 to vector<16x2xi32>
    %43 = arith.addi %32, %42 : vector<16x2xi32>
    %44 = arith.select %41, %43, %32 : vector<16x2xi1>, vector<16x2xi32>
    %45 = arith.cmpi eq, %44, %28 : vector<16x2xi32>
    %46 = arith.extui %45 : vector<16x2xi1> to vector<16x2xi32>
    %47 = arith.sitofp %46 : vector<16x2xi32> to vector<16x2xf32>
    %c0_12 = arith.constant 0 : index
    %c0_13 = arith.constant 0 : index
    %c0_14 = arith.constant 0 : index
    %48 = vector.load %arg3[%c0_12, %c0_13, %c0_14] : memref<3x8x128xf32, #tpu.memory_space<vmem>>, vector<1x8x128xf32>
    %49 = vector.shape_cast %48 : vector<1x8x128xf32> to vector<8x128xf32>
    %50 = vector.extract_strided_slice %49 {offsets = [0, 0], sizes = [1, 32], strides = [1, 1]} : vector<8x128xf32> to vector<1x32xf32>
    %51 = vector.extract_strided_slice %49 {offsets = [1, 0], sizes = [1, 32], strides = [1, 1]} : vector<8x128xf32> to vector<1x32xf32>
    %52 = vector.extract_strided_slice %49 {offsets = [2, 0], sizes = [1, 32], strides = [1, 1]} : vector<8x128xf32> to vector<1x32xf32>
    %53 = vector.extract_strided_slice %49 {offsets = [3, 0], sizes = [1, 64], strides = [1, 1]} : vector<8x128xf32> to vector<1x64xf32>
    %54 = vector.extract_strided_slice %49 {offsets = [4, 0], sizes = [1, 32], strides = [1, 1]} : vector<8x128xf32> to vector<1x32xf32>
    %55 = vector.extract_strided_slice %49 {offsets = [5, 0], sizes = [1, 32], strides = [1, 1]} : vector<8x128xf32> to vector<1x32xf32>
    %56 = vector.extract_strided_slice %49 {offsets = [6, 0], sizes = [1, 32], strides = [1, 1]} : vector<8x128xf32> to vector<1x32xf32>
    %c0_15 = arith.constant 0 : index
    %c0_16 = arith.constant 0 : index
    %c0_17 = arith.constant 0 : index
    %57 = vector.load %arg2[%c0_15, %c0_16, %c0_17] : memref<3x128x64xf32, #tpu.memory_space<vmem>>, vector<1x32x32xf32>
    %58 = vector.shape_cast %57 : vector<1x32x32xf32> to vector<32x32xf32>
    %c0_18 = arith.constant 0 : index
    %c32 = arith.constant 32 : index
    %c0_19 = arith.constant 0 : index
    %59 = vector.load %arg2[%c0_18, %c32, %c0_19] : memref<3x128x64xf32, #tpu.memory_space<vmem>>, vector<1x32x64xf32>
    %60 = vector.shape_cast %59 : vector<1x32x64xf32> to vector<32x64xf32>
    %c0_20 = arith.constant 0 : index
    %c64 = arith.constant 64 : index
    %c0_21 = arith.constant 0 : index
    %61 = vector.load %arg2[%c0_20, %c64, %c0_21] : memref<3x128x64xf32, #tpu.memory_space<vmem>>, vector<1x64x32xf32>
    %62 = vector.shape_cast %61 : vector<1x64x32xf32> to vector<64x32xf32>
    %63 = vector.extract_strided_slice %26 {offsets = [0, 0], sizes = [2, 32], strides = [1, 1]} : vector<16x32xf32> to vector<2x32xf32>
    %cst_22 = arith.constant dense<0.000000e+00> : vector<2x32xf32>
    %64 = tpu.matmul %63, %58, %cst_22 {dimension_numbers = #tpu.dot_dimension_numbers<[1], [0], [0], [1], [0, 0, 1, 1], [], []>} : vector<2x32xf32>, vector<32x32xf32>, vector<2x32xf32> -> vector<2x32xf32>
    %65 = vector.broadcast %50 : vector<1x32xf32> to vector<2x32xf32>
    %66 = arith.addf %64, %65 : vector<2x32xf32>
    %cst_23 = arith.constant dense<0.000000e+00> : vector<16x32xf32>
    %67 = tpu.matmul %47, %66, %cst_23 {dimension_numbers = #tpu.dot_dimension_numbers<[1], [0], [0], [1], [0, 0, 1, 1], [], []>} : vector<16x2xf32>, vector<2x32xf32>, vector<16x32xf32> -> vector<16x32xf32>
    %68 = arith.addf %26, %67 : vector<16x32xf32>
    %cst_24 = arith.constant dense<0.000000e+00> : vector<16xf32>
    %69 = vector.multi_reduction <add>, %68, %cst_24 [1] : vector<16x32xf32> to vector<16xf32>
    %70 = vector.shape_cast %69 : vector<16xf32> to vector<16x1xf32>
    %71 = arith.mulf %68, %68 : vector<16x32xf32>
    %cst_25 = arith.constant dense<0.000000e+00> : vector<16xf32>
    %72 = vector.multi_reduction <add>, %71, %cst_25 [1] : vector<16x32xf32> to vector<16xf32>
    %73 = vector.shape_cast %72 : vector<16xf32> to vector<16x1xf32>
    %cst_26 = arith.constant 3.125000e-02 : f32
    %74 = vector.broadcast %cst_26 : f32 to vector<16x1xf32>
    %75 = arith.mulf %70, %74 : vector<16x1xf32>
    %cst_27 = arith.constant 3.125000e-02 : f32
    %76 = vector.broadcast %cst_27 : f32 to vector<16x1xf32>
    %77 = arith.mulf %73, %76 : vector<16x1xf32>
    %78 = arith.mulf %75, %75 : vector<16x1xf32>
    %79 = arith.subf %77, %78 : vector<16x1xf32>
    %80 = vector.broadcast %75 : vector<16x1xf32> to vector<16x32xf32>
    %81 = arith.subf %68, %80 : vector<16x32xf32>
    %cst_28 = arith.constant 9.99999974E-6 : f32
    %82 = vector.broadcast %cst_28 : f32 to vector<16x1xf32>
    %83 = arith.addf %79, %82 : vector<16x1xf32>
    %84 = math.rsqrt %83 : vector<16x1xf32>
    %85 = vector.broadcast %84 : vector<16x1xf32> to vector<16x32xf32>
    %86 = arith.mulf %81, %85 : vector<16x32xf32>
    %87 = vector.broadcast %51 : vector<1x32xf32> to vector<16x32xf32>
    %88 = arith.mulf %86, %87 : vector<16x32xf32>
    %89 = vector.broadcast %52 : vector<1x32xf32> to vector<16x32xf32>
    %90 = arith.addf %88, %89 : vector<16x32xf32>
    %cst_29 = arith.constant dense<0.000000e+00> : vector<16x64xf32>
    %91 = tpu.matmul %90, %60, %cst_29 {dimension_numbers = #tpu.dot_dimension_numbers<[1], [0], [0], [1], [0, 0, 1, 1], [], []>} : vector<16x32xf32>, vector<32x64xf32>, vector<16x64xf32> -> vector<16x64xf32>
    %92 = vector.broadcast %53 : vector<1x64xf32> to vector<16x64xf32>
    %93 = arith.addf %91, %92 : vector<16x64xf32>
    %cst_30 = arith.constant 0.000000e+00 : f32
    %94 = vector.broadcast %cst_30 : f32 to vector<16x64xf32>
    %95 = arith.maximumf %93, %94 : vector<16x64xf32>
    %cst_31 = arith.constant dense<0.000000e+00> : vector<16x32xf32>
    %96 = tpu.matmul %95, %62, %cst_31 {dimension_numbers = #tpu.dot_dimension_numbers<[1], [0], [0], [1], [0, 0, 1, 1], [], []>} : vector<16x64xf32>, vector<64x32xf32>, vector<16x32xf32> -> vector<16x32xf32>
    %97 = vector.broadcast %54 : vector<1x32xf32> to vector<16x32xf32>
    %98 = arith.addf %96, %97 : vector<16x32xf32>
    %99 = arith.addf %90, %98 : vector<16x32xf32>
    %cst_32 = arith.constant dense<0.000000e+00> : vector<16xf32>
    %100 = vector.multi_reduction <add>, %99, %cst_32 [1] : vector<16x32xf32> to vector<16xf32>
    %101 = vector.shape_cast %100 : vector<16xf32> to vector<16x1xf32>
    %102 = arith.mulf %99, %99 : vector<16x32xf32>
    %cst_33 = arith.constant dense<0.000000e+00> : vector<16xf32>
    %103 = vector.multi_reduction <add>, %102, %cst_33 [1] : vector<16x32xf32> to vector<16xf32>
    %104 = vector.shape_cast %103 : vector<16xf32> to vector<16x1xf32>
    %cst_34 = arith.constant 3.125000e-02 : f32
    %105 = vector.broadcast %cst_34 : f32 to vector<16x1xf32>
    %106 = arith.mulf %101, %105 : vector<16x1xf32>
    %cst_35 = arith.constant 3.125000e-02 : f32
    %107 = vector.broadcast %cst_35 : f32 to vector<16x1xf32>
    %108 = arith.mulf %104, %107 : vector<16x1xf32>
    %109 = arith.mulf %106, %106 : vector<16x1xf32>
    %110 = arith.subf %108, %109 : vector<16x1xf32>
    %111 = vector.broadcast %106 : vector<16x1xf32> to vector<16x32xf32>
    %112 = arith.subf %99, %111 : vector<16x32xf32>
    %cst_36 = arith.constant 9.99999974E-6 : f32
    %113 = vector.broadcast %cst_36 : f32 to vector<16x1xf32>
    %114 = arith.addf %110, %113 : vector<16x1xf32>
    %115 = math.rsqrt %114 : vector<16x1xf32>
    %116 = vector.broadcast %115 : vector<16x1xf32> to vector<16x32xf32>
    %117 = arith.mulf %112, %116 : vector<16x32xf32>
    %118 = vector.broadcast %55 : vector<1x32xf32> to vector<16x32xf32>
    %119 = arith.mulf %117, %118 : vector<16x32xf32>
    %120 = vector.broadcast %56 : vector<1x32xf32> to vector<16x32xf32>
    %121 = arith.addf %119, %120 : vector<16x32xf32>
    %c1 = arith.constant 1 : index
    %c0_37 = arith.constant 0 : index
    %c0_38 = arith.constant 0 : index
    %122 = vector.load %arg3[%c1, %c0_37, %c0_38] : memref<3x8x128xf32, #tpu.memory_space<vmem>>, vector<1x8x128xf32>
    %123 = vector.shape_cast %122 : vector<1x8x128xf32> to vector<8x128xf32>
    %124 = vector.extract_strided_slice %123 {offsets = [0, 0], sizes = [1, 32], strides = [1, 1]} : vector<8x128xf32> to vector<1x32xf32>
    %125 = vector.extract_strided_slice %123 {offsets = [1, 0], sizes = [1, 32], strides = [1, 1]} : vector<8x128xf32> to vector<1x32xf32>
    %126 = vector.extract_strided_slice %123 {offsets = [2, 0], sizes = [1, 32], strides = [1, 1]} : vector<8x128xf32> to vector<1x32xf32>
    %127 = vector.extract_strided_slice %123 {offsets = [3, 0], sizes = [1, 64], strides = [1, 1]} : vector<8x128xf32> to vector<1x64xf32>
    %128 = vector.extract_strided_slice %123 {offsets = [4, 0], sizes = [1, 32], strides = [1, 1]} : vector<8x128xf32> to vector<1x32xf32>
    %129 = vector.extract_strided_slice %123 {offsets = [5, 0], sizes = [1, 32], strides = [1, 1]} : vector<8x128xf32> to vector<1x32xf32>
    %130 = vector.extract_strided_slice %123 {offsets = [6, 0], sizes = [1, 32], strides = [1, 1]} : vector<8x128xf32> to vector<1x32xf32>
    %c1_39 = arith.constant 1 : index
    %c0_40 = arith.constant 0 : index
    %c0_41 = arith.constant 0 : index
    %131 = vector.load %arg2[%c1_39, %c0_40, %c0_41] : memref<3x128x64xf32, #tpu.memory_space<vmem>>, vector<1x32x32xf32>
    %132 = vector.shape_cast %131 : vector<1x32x32xf32> to vector<32x32xf32>
    %c1_42 = arith.constant 1 : index
    %c32_43 = arith.constant 32 : index
    %c0_44 = arith.constant 0 : index
    %133 = vector.load %arg2[%c1_42, %c32_43, %c0_44] : memref<3x128x64xf32, #tpu.memory_space<vmem>>, vector<1x32x64xf32>
    %134 = vector.shape_cast %133 : vector<1x32x64xf32> to vector<32x64xf32>
    %c1_45 = arith.constant 1 : index
    %c64_46 = arith.constant 64 : index
    %c0_47 = arith.constant 0 : index
    %135 = vector.load %arg2[%c1_45, %c64_46, %c0_47] : memref<3x128x64xf32, #tpu.memory_space<vmem>>, vector<1x64x32xf32>
    %136 = vector.shape_cast %135 : vector<1x64x32xf32> to vector<64x32xf32>
    %137 = vector.extract_strided_slice %121 {offsets = [0, 0], sizes = [2, 32], strides = [1, 1]} : vector<16x32xf32> to vector<2x32xf32>
    %cst_48 = arith.constant dense<0.000000e+00> : vector<2x32xf32>
    %138 = tpu.matmul %137, %132, %cst_48 {dimension_numbers = #tpu.dot_dimension_numbers<[1], [0], [0], [1], [0, 0, 1, 1], [], []>} : vector<2x32xf32>, vector<32x32xf32>, vector<2x32xf32> -> vector<2x32xf32>
    %139 = vector.broadcast %124 : vector<1x32xf32> to vector<2x32xf32>
    %140 = arith.addf %138, %139 : vector<2x32xf32>
    %cst_49 = arith.constant dense<0.000000e+00> : vector<16x32xf32>
    %141 = tpu.matmul %47, %140, %cst_49 {dimension_numbers = #tpu.dot_dimension_numbers<[1], [0], [0], [1], [0, 0, 1, 1], [], []>} : vector<16x2xf32>, vector<2x32xf32>, vector<16x32xf32> -> vector<16x32xf32>
    %142 = arith.addf %121, %141 : vector<16x32xf32>
    %cst_50 = arith.constant dense<0.000000e+00> : vector<16xf32>
    %143 = vector.multi_reduction <add>, %142, %cst_50 [1] : vector<16x32xf32> to vector<16xf32>
    %144 = vector.shape_cast %143 : vector<16xf32> to vector<16x1xf32>
    %145 = arith.mulf %142, %142 : vector<16x32xf32>
    %cst_51 = arith.constant dense<0.000000e+00> : vector<16xf32>
    %146 = vector.multi_reduction <add>, %145, %cst_51 [1] : vector<16x32xf32> to vector<16xf32>
    %147 = vector.shape_cast %146 : vector<16xf32> to vector<16x1xf32>
    %cst_52 = arith.constant 3.125000e-02 : f32
    %148 = vector.broadcast %cst_52 : f32 to vector<16x1xf32>
    %149 = arith.mulf %144, %148 : vector<16x1xf32>
    %cst_53 = arith.constant 3.125000e-02 : f32
    %150 = vector.broadcast %cst_53 : f32 to vector<16x1xf32>
    %151 = arith.mulf %147, %150 : vector<16x1xf32>
    %152 = arith.mulf %149, %149 : vector<16x1xf32>
    %153 = arith.subf %151, %152 : vector<16x1xf32>
    %154 = vector.broadcast %149 : vector<16x1xf32> to vector<16x32xf32>
    %155 = arith.subf %142, %154 : vector<16x32xf32>
    %cst_54 = arith.constant 9.99999974E-6 : f32
    %156 = vector.broadcast %cst_54 : f32 to vector<16x1xf32>
    %157 = arith.addf %153, %156 : vector<16x1xf32>
    %158 = math.rsqrt %157 : vector<16x1xf32>
    %159 = vector.broadcast %158 : vector<16x1xf32> to vector<16x32xf32>
    %160 = arith.mulf %155, %159 : vector<16x32xf32>
    %161 = vector.broadcast %125 : vector<1x32xf32> to vector<16x32xf32>
    %162 = arith.mulf %160, %161 : vector<16x32xf32>
    %163 = vector.broadcast %126 : vector<1x32xf32> to vector<16x32xf32>
    %164 = arith.addf %162, %163 : vector<16x32xf32>
    %cst_55 = arith.constant dense<0.000000e+00> : vector<16x64xf32>
    %165 = tpu.matmul %164, %134, %cst_55 {dimension_numbers = #tpu.dot_dimension_numbers<[1], [0], [0], [1], [0, 0, 1, 1], [], []>} : vector<16x32xf32>, vector<32x64xf32>, vector<16x64xf32> -> vector<16x64xf32>
    %166 = vector.broadcast %127 : vector<1x64xf32> to vector<16x64xf32>
    %167 = arith.addf %165, %166 : vector<16x64xf32>
    %cst_56 = arith.constant 0.000000e+00 : f32
    %168 = vector.broadcast %cst_56 : f32 to vector<16x64xf32>
    %169 = arith.maximumf %167, %168 : vector<16x64xf32>
    %cst_57 = arith.constant dense<0.000000e+00> : vector<16x32xf32>
    %170 = tpu.matmul %169, %136, %cst_57 {dimension_numbers = #tpu.dot_dimension_numbers<[1], [0], [0], [1], [0, 0, 1, 1], [], []>} : vector<16x64xf32>, vector<64x32xf32>, vector<16x32xf32> -> vector<16x32xf32>
    %171 = vector.broadcast %128 : vector<1x32xf32> to vector<16x32xf32>
    %172 = arith.addf %170, %171 : vector<16x32xf32>
    %173 = arith.addf %164, %172 : vector<16x32xf32>
    %cst_58 = arith.constant dense<0.000000e+00> : vector<16xf32>
    %174 = vector.multi_reduction <add>, %173, %cst_58 [1] : vector<16x32xf32> to vector<16xf32>
    %175 = vector.shape_cast %174 : vector<16xf32> to vector<16x1xf32>
    %176 = arith.mulf %173, %173 : vector<16x32xf32>
    %cst_59 = arith.constant dense<0.000000e+00> : vector<16xf32>
    %177 = vector.multi_reduction <add>, %176, %cst_59 [1] : vector<16x32xf32> to vector<16xf32>
    %178 = vector.shape_cast %177 : vector<16xf32> to vector<16x1xf32>
    %cst_60 = arith.constant 3.125000e-02 : f32
    %179 = vector.broadcast %cst_60 : f32 to vector<16x1xf32>
    %180 = arith.mulf %175, %179 : vector<16x1xf32>
    %cst_61 = arith.constant 3.125000e-02 : f32
    %181 = vector.broadcast %cst_61 : f32 to vector<16x1xf32>
    %182 = arith.mulf %178, %181 : vector<16x1xf32>
    %183 = arith.mulf %180, %180 : vector<16x1xf32>
    %184 = arith.subf %182, %183 : vector<16x1xf32>
    %185 = vector.broadcast %180 : vector<16x1xf32> to vector<16x32xf32>
    %186 = arith.subf %173, %185 : vector<16x32xf32>
    %cst_62 = arith.constant 9.99999974E-6 : f32
    %187 = vector.broadcast %cst_62 : f32 to vector<16x1xf32>
    %188 = arith.addf %184, %187 : vector<16x1xf32>
    %189 = math.rsqrt %188 : vector<16x1xf32>
    %190 = vector.broadcast %189 : vector<16x1xf32> to vector<16x32xf32>
    %191 = arith.mulf %186, %190 : vector<16x32xf32>
    %192 = vector.broadcast %129 : vector<1x32xf32> to vector<16x32xf32>
    %193 = arith.mulf %191, %192 : vector<16x32xf32>
    %194 = vector.broadcast %130 : vector<1x32xf32> to vector<16x32xf32>
    %195 = arith.addf %193, %194 : vector<16x32xf32>
    %c2 = arith.constant 2 : index
    %c0_63 = arith.constant 0 : index
    %c0_64 = arith.constant 0 : index
    %196 = vector.load %arg3[%c2, %c0_63, %c0_64] : memref<3x8x128xf32, #tpu.memory_space<vmem>>, vector<1x8x128xf32>
    %197 = vector.shape_cast %196 : vector<1x8x128xf32> to vector<8x128xf32>
    %198 = vector.extract_strided_slice %197 {offsets = [0, 0], sizes = [1, 32], strides = [1, 1]} : vector<8x128xf32> to vector<1x32xf32>
    %199 = vector.extract_strided_slice %197 {offsets = [1, 0], sizes = [1, 32], strides = [1, 1]} : vector<8x128xf32> to vector<1x32xf32>
    %200 = vector.extract_strided_slice %197 {offsets = [2, 0], sizes = [1, 32], strides = [1, 1]} : vector<8x128xf32> to vector<1x32xf32>
    %201 = vector.extract_strided_slice %197 {offsets = [3, 0], sizes = [1, 64], strides = [1, 1]} : vector<8x128xf32> to vector<1x64xf32>
    %202 = vector.extract_strided_slice %197 {offsets = [4, 0], sizes = [1, 32], strides = [1, 1]} : vector<8x128xf32> to vector<1x32xf32>
    %203 = vector.extract_strided_slice %197 {offsets = [5, 0], sizes = [1, 32], strides = [1, 1]} : vector<8x128xf32> to vector<1x32xf32>
    %204 = vector.extract_strided_slice %197 {offsets = [6, 0], sizes = [1, 32], strides = [1, 1]} : vector<8x128xf32> to vector<1x32xf32>
    %c2_65 = arith.constant 2 : index
    %c0_66 = arith.constant 0 : index
    %c0_67 = arith.constant 0 : index
    %205 = vector.load %arg2[%c2_65, %c0_66, %c0_67] : memref<3x128x64xf32, #tpu.memory_space<vmem>>, vector<1x32x32xf32>
    %206 = vector.shape_cast %205 : vector<1x32x32xf32> to vector<32x32xf32>
    %c2_68 = arith.constant 2 : index
    %c32_69 = arith.constant 32 : index
    %c0_70 = arith.constant 0 : index
    %207 = vector.load %arg2[%c2_68, %c32_69, %c0_70] : memref<3x128x64xf32, #tpu.memory_space<vmem>>, vector<1x32x64xf32>
    %208 = vector.shape_cast %207 : vector<1x32x64xf32> to vector<32x64xf32>
    %c2_71 = arith.constant 2 : index
    %c64_72 = arith.constant 64 : index
    %c0_73 = arith.constant 0 : index
    %209 = vector.load %arg2[%c2_71, %c64_72, %c0_73] : memref<3x128x64xf32, #tpu.memory_space<vmem>>, vector<1x64x32xf32>
    %210 = vector.shape_cast %209 : vector<1x64x32xf32> to vector<64x32xf32>
    %211 = vector.extract_strided_slice %195 {offsets = [0, 0], sizes = [2, 32], strides = [1, 1]} : vector<16x32xf32> to vector<2x32xf32>
    %cst_74 = arith.constant dense<0.000000e+00> : vector<2x32xf32>
    %212 = tpu.matmul %211, %206, %cst_74 {dimension_numbers = #tpu.dot_dimension_numbers<[1], [0], [0], [1], [0, 0, 1, 1], [], []>} : vector<2x32xf32>, vector<32x32xf32>, vector<2x32xf32> -> vector<2x32xf32>
    %213 = vector.broadcast %198 : vector<1x32xf32> to vector<2x32xf32>
    %214 = arith.addf %212, %213 : vector<2x32xf32>
    %cst_75 = arith.constant dense<0.000000e+00> : vector<16x32xf32>
    %215 = tpu.matmul %47, %214, %cst_75 {dimension_numbers = #tpu.dot_dimension_numbers<[1], [0], [0], [1], [0, 0, 1, 1], [], []>} : vector<16x2xf32>, vector<2x32xf32>, vector<16x32xf32> -> vector<16x32xf32>
    %216 = arith.addf %195, %215 : vector<16x32xf32>
    %cst_76 = arith.constant dense<0.000000e+00> : vector<16xf32>
    %217 = vector.multi_reduction <add>, %216, %cst_76 [1] : vector<16x32xf32> to vector<16xf32>
    %218 = vector.shape_cast %217 : vector<16xf32> to vector<16x1xf32>
    %219 = arith.mulf %216, %216 : vector<16x32xf32>
    %cst_77 = arith.constant dense<0.000000e+00> : vector<16xf32>
    %220 = vector.multi_reduction <add>, %219, %cst_77 [1] : vector<16x32xf32> to vector<16xf32>
    %221 = vector.shape_cast %220 : vector<16xf32> to vector<16x1xf32>
    %cst_78 = arith.constant 3.125000e-02 : f32
    %222 = vector.broadcast %cst_78 : f32 to vector<16x1xf32>
    %223 = arith.mulf %218, %222 : vector<16x1xf32>
    %cst_79 = arith.constant 3.125000e-02 : f32
    %224 = vector.broadcast %cst_79 : f32 to vector<16x1xf32>
    %225 = arith.mulf %221, %224 : vector<16x1xf32>
    %226 = arith.mulf %223, %223 : vector<16x1xf32>
    %227 = arith.subf %225, %226 : vector<16x1xf32>
    %228 = vector.broadcast %223 : vector<16x1xf32> to vector<16x32xf32>
    %229 = arith.subf %216, %228 : vector<16x32xf32>
    %cst_80 = arith.constant 9.99999974E-6 : f32
    %230 = vector.broadcast %cst_80 : f32 to vector<16x1xf32>
    %231 = arith.addf %227, %230 : vector<16x1xf32>
    %232 = math.rsqrt %231 : vector<16x1xf32>
    %233 = vector.broadcast %232 : vector<16x1xf32> to vector<16x32xf32>
    %234 = arith.mulf %229, %233 : vector<16x32xf32>
    %235 = vector.broadcast %199 : vector<1x32xf32> to vector<16x32xf32>
    %236 = arith.mulf %234, %235 : vector<16x32xf32>
    %237 = vector.broadcast %200 : vector<1x32xf32> to vector<16x32xf32>
    %238 = arith.addf %236, %237 : vector<16x32xf32>
    %cst_81 = arith.constant dense<0.000000e+00> : vector<16x64xf32>
    %239 = tpu.matmul %238, %208, %cst_81 {dimension_numbers = #tpu.dot_dimension_numbers<[1], [0], [0], [1], [0, 0, 1, 1], [], []>} : vector<16x32xf32>, vector<32x64xf32>, vector<16x64xf32> -> vector<16x64xf32>
    %240 = vector.broadcast %201 : vector<1x64xf32> to vector<16x64xf32>
    %241 = arith.addf %239, %240 : vector<16x64xf32>
    %cst_82 = arith.constant 0.000000e+00 : f32
    %242 = vector.broadcast %cst_82 : f32 to vector<16x64xf32>
    %243 = arith.maximumf %241, %242 : vector<16x64xf32>
    %cst_83 = arith.constant dense<0.000000e+00> : vector<16x32xf32>
    %244 = tpu.matmul %243, %210, %cst_83 {dimension_numbers = #tpu.dot_dimension_numbers<[1], [0], [0], [1], [0, 0, 1, 1], [], []>} : vector<16x64xf32>, vector<64x32xf32>, vector<16x32xf32> -> vector<16x32xf32>
    %245 = vector.broadcast %202 : vector<1x32xf32> to vector<16x32xf32>
    %246 = arith.addf %244, %245 : vector<16x32xf32>
    %247 = arith.addf %238, %246 : vector<16x32xf32>
    %cst_84 = arith.constant dense<0.000000e+00> : vector<16xf32>
    %248 = vector.multi_reduction <add>, %247, %cst_84 [1] : vector<16x32xf32> to vector<16xf32>
    %249 = vector.shape_cast %248 : vector<16xf32> to vector<16x1xf32>
    %250 = arith.mulf %247, %247 : vector<16x32xf32>
    %cst_85 = arith.constant dense<0.000000e+00> : vector<16xf32>
    %251 = vector.multi_reduction <add>, %250, %cst_85 [1] : vector<16x32xf32> to vector<16xf32>
    %252 = vector.shape_cast %251 : vector<16xf32> to vector<16x1xf32>
    %cst_86 = arith.constant 3.125000e-02 : f32
    %253 = vector.broadcast %cst_86 : f32 to vector<16x1xf32>
    %254 = arith.mulf %249, %253 : vector<16x1xf32>
    %cst_87 = arith.constant 3.125000e-02 : f32
    %255 = vector.broadcast %cst_87 : f32 to vector<16x1xf32>
    %256 = arith.mulf %252, %255 : vector<16x1xf32>
    %257 = arith.mulf %254, %254 : vector<16x1xf32>
    %258 = arith.subf %256, %257 : vector<16x1xf32>
    %259 = vector.broadcast %254 : vector<16x1xf32> to vector<16x32xf32>
    %260 = arith.subf %247, %259 : vector<16x32xf32>
    %cst_88 = arith.constant 9.99999974E-6 : f32
    %261 = vector.broadcast %cst_88 : f32 to vector<16x1xf32>
    %262 = arith.addf %258, %261 : vector<16x1xf32>
    %263 = math.rsqrt %262 : vector<16x1xf32>
    %264 = vector.broadcast %263 : vector<16x1xf32> to vector<16x32xf32>
    %265 = arith.mulf %260, %264 : vector<16x32xf32>
    %266 = vector.broadcast %203 : vector<1x32xf32> to vector<16x32xf32>
    %267 = arith.mulf %265, %266 : vector<16x32xf32>
    %268 = vector.broadcast %204 : vector<1x32xf32> to vector<16x32xf32>
    %269 = arith.addf %267, %268 : vector<16x32xf32>
    %c0_89 = arith.constant 0 : index
    %c0_90 = arith.constant 0 : index
    %270 = vector.load %arg4[%c0_89, %c0_90] : memref<16x32xf32, #tpu.memory_space<vmem>>, vector<16x32xf32>
    tpu.vector_store %arg4[%c0_89, %c0_90], %269 {strides = array<i32>} : memref<16x32xf32, #tpu.memory_space<vmem>>, vector<16x32xf32>,
    return
  }
}

</mosaic_0001>

<bundles_post_ra>
// kernel: custom_transformer_decoder_forward.1
= control target key start
LH: loop header
LB: loop body
LE: loop exit
PB: predicated region body
PF: predicated region fallthrough
CT: control target
= control target key end

     0   :  { %vm24_vm0 = vcmask 261120   ;;  %s2225_s0 = inlined_call_operand.vmem [shape: f32[16,32], index: 0, kind: input, shape index: {}]   ;;  %s2226_s1 = inlined_call_operand.vmem [shape: f32[24,128], index: 1, kind: input, shape index: {}]   ;;  %s2227_s2 = inlined_call_operand.vmem [shape: f32[3,128,64], index: 2, kind: input, shape index: {}]   ;;  %s2228_s3 = inlined_call_operand.vmem [shape: f32[3,8,128], index: 3, kind: input, shape index: {}]   ;;  %s2229_s4 = inlined_call_operand.hbm [shape: f32[16,32], index: 4, kind: output, shape index: {}]  }
   0x1   :  { %v22_v0 = vld [vmem:[%s2225_s0] sm:$0xff] }
   0x2   :  { %9 = vsyncpa [#allocation3], 0  ;;  %v25_v1 = vsel %vm24_vm0, %v22_v0, 0.0  ;;  %v31_v2 = vmul.f32 %v22_v0, %v22_v0  ;;  %v105_v4 = vld [vmem:[%s2227_s2] sm:$0xff]  ;;  %v106_v5 = vld [vmem:[%s2227_s2 + $0x8] sm:$0xff]  ;;  %v1851_v7 = vmov 0.0|0.0   ;;  %v69_v28 = vlaneseq }
   0x3   :  { %26 = vadd.xlane.f32.xlu0 %v25_v1  ;;  %v107_v6 = vld [vmem:[%s2227_s2 + $0x10] sm:$0xff]  ;;  %1703 = vmatprep.subr.bf16.mxu0 %v1851_v7  ;;  %v1704_v8 = vpack.c.bf16 %v106_v5, %v105_v4  ;;  %v108_v9 = vld [vmem:[%s2227_s2 + $0x18] sm:$0xff]  ;;  %vm1852_vm1 = vmmov 0   ;;  %v1853_v10 = vmov 0.0   ;;  %v18_v25 = vld [vmem:[%s2226_s1] sm:$0xff]  ;;  %vm198_vm3 = vcmask 15360  }
   0x4   :  { %v33_v3 = vsel %vm24_vm0, %v31_v2, 0.0  ;;  %1573 = vmatprep.mubr.msk.f32.mxu0 %vm1852_vm1, %v1853_v10  ;;  %v1707_v11 = vpack.c.bf16 %v108_v9, %v107_v6  ;;  %v1431_v21 = vld [vmem:[%s2226_s1 + $0x10] ss:$0 sm:$0xff]  ;;  %v1432_v23 = vld [vmem:[%s2226_s1 + $0x11] ss:$0 sm:$0xff]  ;;  %v1913_v29 = vshrl.u32 %v69_v28, 7 }
   0x5   :  { %1705 = vmatpush3.bf16.msra.mxu0 %v1704_v8  ;;  %v73_v30 = vand.u32 127, %v69_v28  ;;  %v23_v33 = vld [vmem:[%s2225_s0 + $0x8] sm:$0xff]  ;;  %v1933_v39 = vld [vmem:[%s2228_s3] sm:$0xff]  ;;  %vm205_vm5 = vcmask 1041408   ;;  %vm419_vm6 = vcmask 523264  }
   0x6   :  { %1706 = vmatprep.subr.bf16.mxu0 %v1851_v7  ;;  %v78_v31 = vand.u32 1, %v1913_v29  ;;  %v28_v34 = vsel %vm24_vm0, %v23_v33, 0.0  ;;  %v32_v35 = vmul.f32 %v23_v33, %v23_v33  ;;  %v71_v37 = vadd.s32 8, %v1913_v29  ;;  %v19_v58 = vld [vmem:[%s2226_s1 + $0x8] sm:$0xff]  ;;  %v109_v6 = vld [vmem:[%s2227_s2 + $0x20] sm:$0xff] }
   0x7   :  { %34 = vadd.xlane.f32.xlu0 %v33_v3  ;;  %29 = vadd.xlane.f32.xlu1 %v28_v34  ;;  %v1928_v38 = vsub.s32 0, %v1913_v29  ;;  %v110_v8 = vld [vmem:[%s2227_s2 + $0x28] sm:$0xff] }
   0x8   :  { %vm98_vm2 = vcmp.eq.s32.totalorder %v78_v31, %v73_v30  ;;  %v36_v36 = vsel %vm24_vm0, %v32_v35, 0.0  ;;  %v85_v40 = vand.u32 1, %v71_v37  ;;  %v1709_v9 = vpack.c.bf16 %v110_v8, %v109_v6 }
   0x9   :  { %1708 = vmatpush3.bf16.msra.mxu0 %v1707_v11  ;;  %v1917_v32 = vsel %vm98_vm2, 1.0, %v1853_v10  ;;  %v124_v41 = vrot.slane %v1933_v39, %v1928_v38  ;;  %v111_v11 = vld [vmem:[%s2227_s2 + $0x30] sm:$0xff] }
   0xa   :  { %1578 = vmatprep.mubr.msk.f32.mxu1 %vm198_vm3, %v1917_v32  ;;  %vm99_vm4 = vcmp.eq.s32.totalorder %v85_v40, %v73_v30 }
   0xb   :  { %37 = vadd.xlane.f32.xlu1 %v36_v36  ;;  %v1938_v45 = vsel %vm99_vm4, 1.0, %v1853_v10 }
  0x90   :  { %v27_v12 = vpop.xlane.xlu0 %26 }
  0x91   :  { %v39_v13 = vmul.f32 0.03125, %v27_v12  ;;  %v112_v12 = vld [vmem:[%s2227_s2 + $0x38] sm:$0xff] }
  0x93   :  { %v43_v15 = vmul.f32 %v39_v13, %v39_v13  ;;  %v47_v19 = vsub.f32 %v22_v0, %v39_v13  ;;  %v1713_v13 = vpack.c.bf16 %v112_v12, %v111_v11 }
  0x94   :  { %v35_v14 = vpop.xlane.xlu0 %34  ;;  %v30_v46 = vpop.xlane.xlu1 %29 }
  0x95   :  { %v41_v16 = vmul.f32 0.03125, %v35_v14  ;;  %v40_v47 = vmul.f32 0.03125, %v30_v46  ;;  %v113_v14 = vld [vmem:[%s2227_s2 + $0x40] sm:$0xff] }
  0x97   :  { %v45_v17 = vsub.f32 %v41_v16, %v43_v15  ;;  %v44_v49 = vmul.f32 %v40_v47, %v40_v47  ;;  %v48_v53 = vsub.f32 %v23_v33, %v40_v47  ;;  %v114_v15 = vld [vmem:[%s2227_s2 + $0x48] sm:$0xff]  ;;  %v115_v16 = vld [vmem:[%s2227_s2 + $0x50] sm:$0xff] }
  0x98   :  { %v38_v48 = vpop.xlane.xlu1 %37 }
  0x99   :  { %v49_v18 = vadd.f32 1e-05, %v45_v17  ;;  %v42_v50 = vmul.f32 0.03125, %v38_v48  ;;  %v1717_v17 = vpack.c.bf16 %v114_v15, %v113_v14 }
  0x9b   :  { %1799 = vrsqrt.f32 %v49_v18  ;;  %v46_v51 = vsub.f32 %v42_v50, %v44_v49  ;;  %v116_v18 = vld [vmem:[%s2227_s2 + $0x58] sm:$0xff]  ;;  %1718 = vmatprep.subr.bf16.mxu0 %v1717_v17 }
  0x9d   :  { %v50_v52 = vadd.f32 1e-05, %v46_v51 }
  0x9f   :  { %1801 = vrsqrt.f32 %v50_v52 }
  0xa5   :  { %v1800_v20 = vpop.eup %1799 }
  0xa6   :  { %v53_v22 = vmul.f32 %v1800_v20, %v47_v19  ;;  %v1721_v19 = vpack.c.bf16 %v116_v18, %v115_v16  ;;  %v117_v20 = vld [vmem:[%s2227_s2 + $0x60] sm:$0xff] }
  0xa8   :  { %v59_v24 = vmul.f32 %v1431_v21, %v53_v22 }
  0xa9   :  { %v1802_v54 = vpop.eup %1801 }
  0xaa   :  { %v65_v26 = vadd.f32 %v1432_v23, %v59_v24  ;;  %v54_v55 = vmul.f32 %v1802_v54, %v48_v53 }
  0xac   :  { %v67_v27 = vadd.f32 %v65_v26, %v18_v25  ;;  %v60_v56 = vmul.f32 %v1431_v21, %v54_v55  ;;  %v118_v21 = vld [vmem:[%s2227_s2 + $0x68] sm:$0xff] }
  0xad   :  { %v1725_v22 = vpack.c.bf16 %v118_v21, %v117_v20  ;;  %v1445_v20 = vld [vmem:[%s2227_s2 + $0x88] sm:$0xff] }
  0xae   :  { %1574 = vmatmul.mubr.msk.f32.vlgmr.msra.gmra.mrb[0].mxu0 %vm24_vm0, %v67_v27  ;;  %v66_v57 = vadd.f32 %v1432_v23, %v60_v56  ;;  %v119_v56 = vld [vmem:[%s2227_s2 + $0x70] sm:$0xff] }
  0xaf   :  { %1720 = vmatpush3.bf16.msra.mxu0 %v1717_v17 }
  0xb0   :  { %v68_v59 = vadd.f32 %v66_v57, %v19_v58  ;;  %1722 = vmatprep.subr.bf16.mxu0 %v1721_v19  ;;  %v120_v57 = vld [vmem:[%s2227_s2 + $0x78] sm:$0xff] }
  0xb1   :  { %v1729_v58 = vpack.c.bf16 %v120_v57, %v119_v56 }
  0xb3   :  { %1724 = vmatpush3.bf16.msra.mxu0 %v1721_v19  ;;  %v1444_v19 = vld [vmem:[%s2227_s2 + $0x80] sm:$0xff] }
  0xb4   :  { %1726 = vmatprep.subr.bf16.mxu0 %v1725_v22  ;;  %v1734_v21 = vpack.c.bf16 %v1445_v20, %v1444_v19  ;;  %v1452_v19 = vld [vmem:[%s2227_s2 + $0xc0] sm:$0xff]  ;;  %v1453_v20 = vld [vmem:[%s2227_s2 + $0xc8] sm:$0xff] }
  0xb7   :  { %1728 = vmatpush3.bf16.msra.mxu0 %v1725_v22  ;;  %v1446_v22 = vld [vmem:[%s2227_s2 + $0x90] sm:$0xff] }
  0xb8   :  { %1730 = vmatprep.subr.bf16.mxu0 %v1729_v58 }
  0xbb   :  { %1732 = vmatpush3.bf16.msra.mxu0 %v1729_v58 }
 0x181   :  { %v194_v42 = vpop.f32.mrb[0].mxu0 }
 0x182   :  { %v195_v43 = vadd.f32 %v194_v42, %v124_v41  ;;  %v1575_v44 = vpop.f32.mrb[1].mxu0  ;;  %v1988_v41 = vsub.s32 1, %v1913_v29  ;;  %v1991_v42 = vsub.s32 2, %v1913_v29 }
 0x184   :  { %1576 = vmatprep.subr.msk.mxu1 %vm205_vm5, %v195_v43  ;;  %v319_v44 = vrot.slane %v1933_v39, %v1988_v41  ;;  %v325_v51 = vrot.slane %v1933_v39, %v1991_v42 }
 0x185   :  { %1577 = vmatpush3.msk.msra.mxu1 %vm205_vm5, %v195_v43 }
 0x186   :  { %1579 = vmatmul.mubr.msk.f32.vlgmr.msra.gmra.mrb[0].mxu1 %vm198_vm3, %v1938_v45  ;;  %1710 = vmatprep.subr.bf16.mxu1 %v1709_v9 }
 0x187   :  { %1712 = vmatpush3.bf16.msra.mxu1 %v1709_v9 }
 0x188   :  { %1714 = vmatprep.subr.bf16.mxu1 %v1713_v13 }
 0x18b   :  { %1716 = vmatpush3.bf16.msra.mxu1 %v1713_v13 }
 0x18c   :  { %1733 = vmatprep.subr.bf16.mxu1 %v1851_v7 }
 0x259   :  { %v1580_v60 = vpop.f32.mrb[0].mxu1 }
 0x25a   :  { %v1947_v61 = vadd.f32 %v1580_v60, %v68_v59  ;;  %v275_v62 = vpop.f32.mrb[1].mxu1  ;;  %v2009_v59 = vsub.s32 3, %v1913_v29 }
 0x25b   :  { %v284_v63 = vadd.f32 %v275_v62, %v67_v27 }
 0x25c   :  { %v289_v0 = vsel %vm24_vm0, %v1947_v61, 0.0  ;;  %v293_v1 = vmul.f32 %v1947_v61, %v1947_v61  ;;  %v331_v60 = vrot.slane %v1933_v39, %v2009_v59 }
 0x25d   :  { %290 = vadd.xlane.f32.xlu1 %v289_v0  ;;  %v286_v2 = vsel %vm24_vm0, %v284_v63, 0.0  ;;  %v292_v3 = vmul.f32 %v284_v63, %v284_v63 }
 0x25e   :  { %287 = vadd.xlane.f32.xlu0 %v286_v2  ;;  %v297_v4 = vsel %vm24_vm0, %v293_v1, 0.0 }
 0x25f   :  { %v294_v5 = vsel %vm24_vm0, %v292_v3, 0.0  ;;  %v2018_v3 = vsub.s32 4, %v1913_v29 }
 0x261   :  { %298 = vadd.xlane.f32.xlu1 %v297_v4  ;;  %v418_v4 = vrot.slane %v1933_v39, %v2018_v3 }
 0x262   :  { %295 = vadd.xlane.f32.xlu0 %v294_v5 }
 0x2ea   :  { %v291_v23 = vpop.xlane.xlu1 %290 }
 0x2eb   :  { %v301_v24 = vmul.f32 0.03125, %v291_v23  ;;  %v288_v25 = vpop.xlane.xlu0 %287  ;;  %v1447_v23 = vld [vmem:[%s2227_s2 + $0x98] sm:$0xff] }
 0x2ec   :  { %v300_v26 = vmul.f32 0.03125, %v288_v25 }
 0x2ed   :  { %v305_v28 = vmul.f32 %v301_v24, %v301_v24  ;;  %v309_v43 = vsub.f32 %v1947_v61, %v301_v24  ;;  %v1737_v24 = vpack.c.bf16 %v1447_v23, %v1446_v22  ;;  %v1747_v22 = vpack.c.bf16 %v1453_v20, %v1452_v19  ;;  %v1455_v23 = vld [vmem:[%s2227_s2 + $0xd8] sm:$0xff] }
 0x2ee   :  { %v299_v27 = vpop.xlane.xlu1 %298  ;;  %v304_v33 = vmul.f32 %v300_v26, %v300_v26  ;;  %v308_v47 = vsub.f32 %v284_v63, %v300_v26 }
 0x2ef   :  { %v303_v30 = vmul.f32 0.03125, %v299_v27  ;;  %v296_v31 = vpop.xlane.xlu0 %295 }
 0x2f0   :  { %v302_v34 = vmul.f32 0.03125, %v296_v31 }
 0x2f1   :  { %v307_v35 = vsub.f32 %v303_v30, %v305_v28 }
 0x2f2   :  { %v306_v36 = vsub.f32 %v302_v34, %v304_v33 }
 0x2f3   :  { %v311_v37 = vadd.f32 1e-05, %v307_v35 }
 0x2f4   :  { %v310_v40 = vadd.f32 1e-05, %v306_v36 }
 0x2f5   :  { %1803 = vrsqrt.f32 %v311_v37 }
 0x2f6   :  { %1805 = vrsqrt.f32 %v310_v40 }
 0x2ff   :  { %v1804_v46 = vpop.eup %1803 }
 0x300   :  { %v1806_v48 = vpop.eup %1805  ;;  %v315_v49 = vmul.f32 %v1804_v46, %v309_v43  ;;  %v2040_v46 = vsub.s32 5, %v1913_v29 }
 0x301   :  { %v314_v50 = vmul.f32 %v1806_v48, %v308_v47  ;;  %v2043_v47 = vsub.s32 6, %v1913_v29  ;;  %v2053_v29 = vld [vmem:[%s2228_s3 + $0x8] sm:$0xff] }
 0x302   :  { %v321_v52 = vmul.f32 %v319_v44, %v315_v49  ;;  %v536_v49 = vrot.slane %v1933_v39, %v2040_v46 }
 0x303   :  { %v320_v53 = vmul.f32 %v319_v44, %v314_v50 }
 0x304   :  { %v327_v55 = vadd.f32 %v325_v51, %v321_v52  ;;  %v542_v52 = vrot.slane %v1933_v39, %v2043_v47 }
 0x305   :  { %v326_v54 = vadd.f32 %v325_v51, %v320_v53 }
 0x307   :  { %1589 = vmatprep.mubr.msk.f32.mxu1 %vm24_vm0, %v326_v54 }
 0x308   :  { %1590 = vmatmul.mubr.msk.f32.vlgmr.msra.gmra.mrb[2].mxu1 %vm24_vm0, %v327_v55 }
 0x309   :  { %1619 = vmatprep.mubr.msk.f32.mxu1 %vm1852_vm1, %v1853_v10  ;;  %1735 = vmatpush3.bf16.msra.mxu1 %v1734_v21  ;;  %v1454_v21 = vld [vmem:[%s2227_s2 + $0xd0] sm:$0xff] }
 0x30a   :  { %1736 = vmatprep.subr.bf16.mxu1 %v1851_v7 }
 0x30d   :  { %1738 = vmatpush3.bf16.msra.mxu1 %v1737_v24  ;;  %v1751_v24 = vpack.c.bf16 %v1455_v23, %v1454_v21 }
 0x3db   :  { %v1591_v61 = vpop.f32.mrb[2].mxu1 }
 0x3dc   :  { %v410_v62 = vadd.f32 %v1591_v61, %v331_v60  ;;  %v404_v63 = vpop.f32.mrb[3].mxu1  ;;  %v567_v61 = vrot.slane %v2053_v29, %v1928_v38 }
 0x3dd   :  { %v405_v0 = vadd.f32 %v404_v63, %v331_v60 }
 0x3de   :  { %v414_v2 = vmax.f32 %v410_v62, 0.0 }
 0x3df   :  { %v413_v1 = vmax.f32 %v405_v0, 0.0 }
 0x3e1   :  { %1608 = vmatprep.mubr.msk.f32.mxu0 %vm419_vm6, %v413_v1 }
 0x3e2   :  { %1609 = vmatmul.mubr.msk.f32.vlgmr.msra.gmra.mrb[2].mxu0 %vm419_vm6, %v414_v2 }
 0x3e3   :  { %1624 = vmatprep.mubr.msk.f32.mxu0 %vm198_vm3, %v1917_v32 }
 0x4b5   :  { %v1610_v5 = vpop.f32.mrb[2].mxu0 }
 0x4b6   :  { %v498_v6 = vadd.f32 %v1610_v5, %v418_v4  ;;  %v492_v8 = vpop.f32.mrb[3].mxu0 }
 0x4b7   :  { %v493_v9 = vadd.f32 %v492_v8, %v418_v4 }
 0x4b8   :  { %v502_v11 = vadd.f32 %v498_v6, %v327_v55 }
 0x4b9   :  { %v501_v12 = vadd.f32 %v493_v9, %v326_v54 }
 0x4ba   :  { %v510_v16 = vmul.f32 %v502_v11, %v502_v11  ;;  %v506_v17 = vsel %vm24_vm0, %v502_v11, 0.0 }
 0x4bb   :  { %v503_v13 = vsel %vm24_vm0, %v501_v12, 0.0  ;;  %v509_v14 = vmul.f32 %v501_v12, %v501_v12 }
 0x4bc   :  { %504 = vadd.xlane.f32.xlu0 %v503_v13  ;;  %v514_v18 = vsel %vm24_vm0, %v510_v16, 0.0  ;;  %v1448_v13 = vld [vmem:[%s2227_s2 + $0xa0] sm:$0xff]  ;;  %v1450_v16 = vld [vmem:[%s2227_s2 + $0xb0] sm:$0xff] }
 0x4bd   :  { %v511_v15 = vsel %vm24_vm0, %v509_v14, 0.0  ;;  %v1449_v14 = vld [vmem:[%s2227_s2 + $0xa8] sm:$0xff] }
 0x4be   :  { %512 = vadd.xlane.f32.xlu1 %v511_v15  ;;  %v1739_v15 = vpack.c.bf16 %v1449_v14, %v1448_v13 }
 0x4c0   :  { %507 = vadd.xlane.f32.xlu0 %v506_v17  ;;  %1740 = vmatprep.subr.bf16.mxu1 %v1739_v15  ;;  %v1451_v17 = vld [vmem:[%s2227_s2 + $0xb8] sm:$0xff] }
 0x4c2   :  { %515 = vadd.xlane.f32.xlu1 %v514_v18  ;;  %v1743_v18 = vpack.c.bf16 %v1451_v17, %v1450_v16 }
 0x549   :  { %v505_v25 = vpop.xlane.xlu0 %504 }
 0x54a   :  { %v517_v26 = vmul.f32 0.03125, %v505_v25  ;;  %v1456_v25 = vld [vmem:[%s2227_s2 + $0xe0] sm:$0xff] }
 0x54b   :  { %v513_v27 = vpop.xlane.xlu1 %512 }
 0x54c   :  { %v521_v28 = vmul.f32 %v517_v26, %v517_v26  ;;  %v519_v30 = vmul.f32 0.03125, %v513_v27  ;;  %v525_v48 = vsub.f32 %v501_v12, %v517_v26  ;;  %v1457_v26 = vld [vmem:[%s2227_s2 + $0xe8] sm:$0xff] }
 0x54d   :  { %v508_v31 = vpop.xlane.xlu0 %507  ;;  %v1755_v27 = vpack.c.bf16 %v1457_v26, %v1456_v25  ;;  %v1470_v25 = vld [vmem:[%s2227_s2 + $0x108] sm:$0xff] }
 0x54e   :  { %v523_v33 = vsub.f32 %v519_v30, %v521_v28  ;;  %v518_v34 = vmul.f32 0.03125, %v508_v31 }
 0x54f   :  { %v516_v35 = vpop.xlane.xlu1 %515 }
 0x550   :  { %v527_v36 = vadd.f32 1e-05, %v523_v33  ;;  %v522_v37 = vmul.f32 %v518_v34, %v518_v34  ;;  %v520_v40 = vmul.f32 0.03125, %v516_v35  ;;  %v526_v53 = vsub.f32 %v502_v11, %v518_v34 }
 0x552   :  { %1807 = vrsqrt.f32 %v527_v36  ;;  %v524_v43 = vsub.f32 %v520_v40, %v522_v37 }
 0x554   :  { %v528_v44 = vadd.f32 1e-05, %v524_v43 }
 0x556   :  { %1809 = vrsqrt.f32 %v528_v44 }
 0x55c   :  { %v1808_v50 = vpop.eup %1807 }
 0x55d   :  { %v531_v51 = vmul.f32 %v1808_v50, %v525_v48 }
 0x55f   :  { %v537_v54 = vmul.f32 %v536_v49, %v531_v51 }
 0x560   :  { %v1810_v55 = vpop.eup %1809 }
 0x561   :  { %v543_v56 = vadd.f32 %v542_v52, %v537_v54  ;;  %v532_v57 = vmul.f32 %v1810_v55, %v526_v53 }
 0x563   :  { %1620 = vmatmul.mubr.msk.f32.vlgmr.msra.gmra.mrb[4].mxu1 %vm24_vm0, %v543_v56  ;;  %v538_v58 = vmul.f32 %v536_v49, %v532_v57 }
 0x564   :  { %1742 = vmatpush3.bf16.msra.mxu1 %v1739_v15 }
 0x565   :  { %v544_v60 = vadd.f32 %v542_v52, %v538_v58  ;;  %1744 = vmatprep.subr.bf16.mxu1 %v1743_v18  ;;  %v754_v52 = vrot.slane %v2053_v29, %v1988_v41  ;;  %v760_v58 = vrot.slane %v2053_v29, %v1991_v42 }
 0x568   :  { %1746 = vmatpush3.bf16.msra.mxu1 %v1743_v18 }
 0x569   :  { %1763 = vmatprep.subr.bf16.mxu1 %v1851_v7 }
 0x636   :  { %v637_v62 = vpop.f32.mrb[4].mxu1 }
 0x637   :  { %v638_v63 = vadd.f32 %v637_v62, %v567_v61  ;;  %v1621_v39 = vpop.f32.mrb[5].mxu1 }
 0x638   :  { %v1458_v39 = vld [vmem:[%s2227_s2 + $0xf0] sm:$0xff] }
 0x639   :  { %1622 = vmatprep.subr.msk.mxu0 %vm205_vm5, %v638_v63 }
 0x63a   :  { %1623 = vmatpush3.msk.msra.mxu0 %vm205_vm5, %v638_v63 }
 0x63b   :  { %1625 = vmatmul.mubr.msk.f32.vlgmr.msra.gmra.mrb[4].mxu0 %vm198_vm3, %v1938_v45  ;;  %1748 = vmatprep.subr.bf16.mxu0 %v1747_v22 }
 0x63c   :  { %1750 = vmatpush3.bf16.msra.mxu0 %v1747_v22 }
 0x63d   :  { %1752 = vmatprep.subr.bf16.mxu0 %v1751_v24 }
 0x640   :  { %1754 = vmatpush3.bf16.msra.mxu0 %v1751_v24  ;;  %v1469_v24 = vld [vmem:[%s2227_s2 + $0x100] sm:$0xff] }
 0x641   :  { %1756 = vmatprep.subr.bf16.mxu0 %v1755_v27  ;;  %v1764_v26 = vpack.c.bf16 %v1470_v25, %v1469_v24  ;;  %v1481_v25 = vld [vmem:[%s2227_s2 + $0x160] sm:$0xff] }
 0x644   :  { %1758 = vmatpush3.bf16.msra.mxu0 %v1755_v27  ;;  %v1471_v27 = vld [vmem:[%s2227_s2 + $0x110] sm:$0xff] }
 0x70e   :  { %v1626_v0 = vpop.f32.mrb[4].mxu0 }
 0x70f   :  { %v720_v1 = vadd.f32 %v1626_v0, %v544_v60  ;;  %v710_v2 = vpop.f32.mrb[5].mxu0  ;;  %v1459_v0 = vld [vmem:[%s2227_s2 + $0xf8] sm:$0xff] }
 0x710   :  { %v719_v4 = vadd.f32 %v710_v2, %v543_v56  ;;  %v766_v2 = vrot.slane %v2053_v29, %v2009_v59 }
 0x711   :  { %v724_v5 = vsel %vm24_vm0, %v720_v1, 0.0  ;;  %v728_v6 = vmul.f32 %v720_v1, %v720_v1 }
 0x712   :  { %725 = vadd.xlane.f32.xlu1 %v724_v5  ;;  %v721_v8 = vsel %vm24_vm0, %v719_v4, 0.0  ;;  %v727_v9 = vmul.f32 %v719_v4, %v719_v4 }
 0x713   :  { %722 = vadd.xlane.f32.xlu0 %v721_v8  ;;  %v732_v11 = vsel %vm24_vm0, %v728_v6, 0.0 }
 0x714   :  { %v729_v12 = vsel %vm24_vm0, %v727_v9, 0.0 }
 0x716   :  { %733 = vadd.xlane.f32.xlu1 %v732_v11  ;;  %v853_v11 = vrot.slane %v2053_v29, %v2018_v3 }
 0x717   :  { %730 = vadd.xlane.f32.xlu0 %v729_v12 }
 0x79f   :  { %v726_v28 = vpop.xlane.xlu1 %725 }
 0x7a0   :  { %v736_v30 = vmul.f32 0.03125, %v726_v28  ;;  %v723_v31 = vpop.xlane.xlu0 %722  ;;  %v1472_v28 = vld [vmem:[%s2227_s2 + $0x118] sm:$0xff] }
 0x7a1   :  { %v735_v33 = vmul.f32 0.03125, %v723_v31 }
 0x7a2   :  { %v740_v35 = vmul.f32 %v736_v30, %v736_v30  ;;  %v744_v51 = vsub.f32 %v720_v1, %v736_v30  ;;  %v1759_v1 = vpack.c.bf16 %v1459_v0, %v1458_v39  ;;  %v1767_v30 = vpack.c.bf16 %v1472_v28, %v1471_v27  ;;  %v2143_v0 = vld [vmem:[%s2228_s3 + $0x10] sm:$0xff] }
 0x7a3   :  { %v734_v34 = vpop.xlane.xlu1 %733  ;;  %v739_v40 = vmul.f32 %v735_v33, %v735_v33  ;;  %v743_v54 = vsub.f32 %v719_v4, %v735_v33 }
 0x7a4   :  { %v738_v36 = vmul.f32 0.03125, %v734_v34  ;;  %v731_v37 = vpop.xlane.xlu0 %730  ;;  %1760 = vmatprep.subr.bf16.mxu0 %v1759_v1 }
 0x7a5   :  { %v737_v43 = vmul.f32 0.03125, %v731_v37  ;;  %1762 = vmatpush3.bf16.msra.mxu0 %v1759_v1 }
 0x7a6   :  { %v742_v44 = vsub.f32 %v738_v36, %v740_v35 }
 0x7a7   :  { %v741_v48 = vsub.f32 %v737_v43, %v739_v40 }
 0x7a8   :  { %v746_v49 = vadd.f32 1e-05, %v742_v44 }
 0x7a9   :  { %v745_v50 = vadd.f32 1e-05, %v741_v48 }
 0x7aa   :  { %1811 = vrsqrt.f32 %v746_v49 }
 0x7ab   :  { %1813 = vrsqrt.f32 %v745_v50 }
 0x7b4   :  { %v1812_v53 = vpop.eup %1811 }
 0x7b5   :  { %v1814_v55 = vpop.eup %1813  ;;  %v750_v56 = vmul.f32 %v1812_v53, %v744_v51  ;;  %v970_v53 = vrot.slane %v2053_v29, %v2040_v46 }
 0x7b6   :  { %v749_v57 = vmul.f32 %v1814_v55, %v743_v54 }
 0x7b7   :  { %v756_v60 = vmul.f32 %v754_v52, %v750_v56  ;;  %v976_v56 = vrot.slane %v2053_v29, %v2043_v47  ;;  %v1001_v29 = vrot.slane %v2143_v0, %v1928_v38 }
 0x7b8   :  { %v755_v61 = vmul.f32 %v754_v52, %v749_v57 }
 0x7b9   :  { %v762_v63 = vadd.f32 %v760_v58, %v756_v60 }
 0x7ba   :  { %v761_v62 = vadd.f32 %v760_v58, %v755_v61 }
 0x7bc   :  { %1635 = vmatprep.mubr.msk.f32.mxu1 %vm24_vm0, %v761_v62 }
 0x7bd   :  { %1636 = vmatmul.mubr.msk.f32.vlgmr.msra.gmra.mrb[6].mxu1 %vm24_vm0, %v762_v63 }
 0x7be   :  { %1665 = vmatprep.mubr.msk.f32.mxu1 %vm1852_vm1, %v1853_v10  ;;  %1765 = vmatpush3.bf16.msra.mxu1 %v1764_v26  ;;  %v1482_v26 = vld [vmem:[%s2227_s2 + $0x168] sm:$0xff] }
 0x7bf   :  { %1766 = vmatprep.subr.bf16.mxu1 %v1851_v7  ;;  %v1785_v27 = vpack.c.bf16 %v1482_v26, %v1481_v25 }
 0x7c2   :  { %1768 = vmatpush3.bf16.msra.mxu1 %v1767_v30 }
 0x890   :  { %v1637_v4 = vpop.f32.mrb[6].mxu1 }
 0x891   :  { %v845_v5 = vadd.f32 %v1637_v4, %v766_v2  ;;  %v839_v6 = vpop.f32.mrb[7].mxu1 }
 0x892   :  { %v840_v8 = vadd.f32 %v839_v6, %v766_v2 }
 0x893   :  { %v849_v10 = vmax.f32 %v845_v5, 0.0 }
 0x894   :  { %v848_v9 = vmax.f32 %v840_v8, 0.0 }
 0x896   :  { %1654 = vmatprep.mubr.msk.f32.mxu0 %vm419_vm6, %v848_v9 }
 0x897   :  { %1655 = vmatmul.mubr.msk.f32.vlgmr.msra.gmra.mrb[6].mxu0 %vm419_vm6, %v849_v10 }
 0x96a   :  { %v1656_v12 = vpop.f32.mrb[6].mxu0 }
 0x96b   :  { %v932_v13 = vadd.f32 %v1656_v12, %v853_v11  ;;  %v926_v14 = vpop.f32.mrb[7].mxu0 }
 0x96c   :  { %v927_v15 = vadd.f32 %v926_v14, %v853_v11  ;;  %v1474_v14 = vld [vmem:[%s2227_s2 + $0x128] sm:$0xff] }
 0x96d   :  { %v936_v16 = vadd.f32 %v932_v13, %v762_v63 }
 0x96e   :  { %v935_v17 = vadd.f32 %v927_v15, %v761_v62 }
 0x96f   :  { %v944_v21 = vmul.f32 %v936_v16, %v936_v16  ;;  %v940_v22 = vsel %vm24_vm0, %v936_v16, 0.0 }
 0x970   :  { %v937_v18 = vsel %vm24_vm0, %v935_v17, 0.0  ;;  %v943_v19 = vmul.f32 %v935_v17, %v935_v17 }
 0x971   :  { %938 = vadd.xlane.f32.xlu0 %v937_v18  ;;  %v948_v23 = vsel %vm24_vm0, %v944_v21, 0.0  ;;  %v1479_v21 = vld [vmem:[%s2227_s2 + $0x150] sm:$0xff] }
 0x972   :  { %v945_v20 = vsel %vm24_vm0, %v943_v19, 0.0  ;;  %v1477_v19 = vld [vmem:[%s2227_s2 + $0x140] sm:$0xff] }
 0x973   :  { %946 = vadd.xlane.f32.xlu1 %v945_v20  ;;  %v1478_v20 = vld [vmem:[%s2227_s2 + $0x148] sm:$0xff] }
 0x975   :  { %941 = vadd.xlane.f32.xlu0 %v940_v22  ;;  %v1777_v22 = vpack.c.bf16 %v1478_v20, %v1477_v19 }
 0x977   :  { %949 = vadd.xlane.f32.xlu1 %v948_v23  ;;  %v1480_v23 = vld [vmem:[%s2227_s2 + $0x158] sm:$0xff] }
 0x978   :  { %v1781_v24 = vpack.c.bf16 %v1480_v23, %v1479_v21 }
 0x9fe   :  { %v939_v31 = vpop.xlane.xlu0 %938 }
 0x9ff   :  { %v951_v33 = vmul.f32 0.03125, %v939_v31 }
 0xa00   :  { %v947_v34 = vpop.xlane.xlu1 %946 }
 0xa01   :  { %v955_v35 = vmul.f32 %v951_v33, %v951_v33  ;;  %v953_v36 = vmul.f32 0.03125, %v947_v34  ;;  %v959_v52 = vsub.f32 %v935_v17, %v951_v33  ;;  %v1476_v17 = vld [vmem:[%s2227_s2 + $0x138] sm:$0xff] }
 0xa02   :  { %v942_v37 = vpop.xlane.xlu0 %941 }
 0xa03   :  { %v957_v40 = vsub.f32 %v953_v36, %v955_v35  ;;  %v952_v43 = vmul.f32 0.03125, %v942_v37 }
 0xa04   :  { %v950_v44 = vpop.xlane.xlu1 %949 }
 0xa05   :  { %v961_v7 = vadd.f32 1e-05, %v957_v40  ;;  %v956_v48 = vmul.f32 %v952_v43, %v952_v43  ;;  %v954_v49 = vmul.f32 0.03125, %v950_v44  ;;  %v960_v57 = vsub.f32 %v936_v16, %v952_v43  ;;  %v1475_v16 = vld [vmem:[%s2227_s2 + $0x130] sm:$0xff] }
 0xa06   :  { %v1773_v18 = vpack.c.bf16 %v1476_v17, %v1475_v16 }
 0xa07   :  { %1815 = vrsqrt.f32 %v961_v7  ;;  %v958_v50 = vsub.f32 %v954_v49, %v956_v48 }
 0xa09   :  { %v962_v51 = vadd.f32 1e-05, %v958_v50 }
 0xa0b   :  { %1817 = vrsqrt.f32 %v962_v51  ;;  %v1188_v51 = vrot.slane %v2143_v0, %v1988_v41  ;;  %v1483_v41 = vld [vmem:[%s2227_s2 + $0x170] sm:$0xff] }
 0xa11   :  { %v1816_v54 = vpop.eup %1815 }
 0xa12   :  { %v965_v55 = vmul.f32 %v1816_v54, %v959_v52 }
 0xa14   :  { %v971_v58 = vmul.f32 %v970_v53, %v965_v55 }
 0xa15   :  { %v1818_v60 = vpop.eup %1817 }
 0xa16   :  { %v977_v61 = vadd.f32 %v976_v56, %v971_v58  ;;  %v966_v62 = vmul.f32 %v1818_v60, %v960_v57  ;;  %v1194_v57 = vrot.slane %v2143_v0, %v1991_v42  ;;  %v1200_v42 = vrot.slane %v2143_v0, %v2009_v59 }
 0xa18   :  { %1666 = vmatmul.mubr.msk.f32.vlgmr.msra.gmra.mrb[8].mxu1 %vm24_vm0, %v977_v61  ;;  %v972_v63 = vmul.f32 %v970_v53, %v966_v62 }
 0xa19   :  { %1670 = vmatprep.mubr.msk.f32.mxu1 %vm198_vm3, %v1917_v32 }
 0xa1a   :  { %v978_v39 = vadd.f32 %v976_v56, %v972_v63  ;;  %v1484_v63 = vld [vmem:[%s2227_s2 + $0x178] sm:$0xff] }
 0xaeb   :  { %v1071_v1 = vpop.f32.mrb[8].mxu1 }
 0xaec   :  { %v1072_v2 = vadd.f32 %v1071_v1, %v1001_v29  ;;  %v1667_v4 = vpop.f32.mrb[9].mxu1 }
 0xaee   :  { %1668 = vmatprep.subr.msk.mxu1 %vm205_vm5, %v1072_v2 }
 0xaef   :  { %1669 = vmatpush3.msk.msra.mxu1 %vm205_vm5, %v1072_v2 }
 0xaf0   :  { %1671 = vmatmul.mubr.msk.f32.vlgmr.msra.gmra.mrb[10].mxu1 %vm198_vm3, %v1938_v45  ;;  %v1473_v45 = vld [vmem:[%s2227_s2 + $0x120] sm:$0xff]  ;;  %1778 = vmatprep.subr.bf16.mxu1 %v1777_v22  ;;  %s1854_s2 = smov [#allocation2]  }
 0xaf1   :  { %v1769_v15 = vpack.c.bf16 %v1474_v14, %v1473_v45  ;;  %1780 = vmatpush3.bf16.msra.mxu1 %v1777_v22  ;;  %s1420_s16 = sshll.u32 %s1854_s2, 4  ;;  %s1421_s16 = int_to_ptr.vmem [resolvable:$true] %s1420_s16 }
 0xaf2   :  { %1782 = vmatprep.subr.bf16.mxu1 %v1781_v24  ;;  %s1827_s17 = scalar_lea.vmem %s1421_s16, 256  ;;  %p1832_p1 = scmp.lt.s32.totalorder %s1421_s16, %s1421_s16 }
 0xaf3   :  { %1770 = vmatprep.subr.bf16.mxu0 %v1769_v15  ;;  %p1828_p0 = scmp.ne.s32.totalorder %s1421_s16, %s1827_s17  ;;  %p1833_p2 = scmp.lt.s32.totalorder %s1827_s17, %s1827_s17 }
 0xaf4   :  { %1772 = vmatpush3.bf16.msra.mxu0 %v1769_v15 }
 0xaf5   :  { %1774 = vmatprep.subr.bf16.mxu0 %v1773_v18  ;;  %1784 = vmatpush3.bf16.msra.mxu1 %v1781_v24  ;;  %p1834_p3 = por %p1833_p2, %p1832_p1 }
 0xaf6   :  { %1786 = vmatprep.subr.bf16.mxu1 %v1785_v27 }
 0xaf7   :  { %p1835_p4 = pnand %p1834_p3, %p1828_p0 }
 0xaf8   :  { %1776 = vmatpush3.bf16.msra.mxu0 %v1773_v18 }
 0xaf9   :  { %1788 = vmatpush3.bf16.msra.mxu1 %v1785_v27 }
 0xbc3   :  { %v1672_v32 = vpop.f32.mrb[10].mxu1 }
 0xbc4   :  { %v1154_v5 = vadd.f32 %v1672_v32, %v978_v39  ;;  %v1144_v6 = vpop.f32.mrb[11].mxu1  ;;  %v1789_v39 = vpack.c.bf16 %v1484_v63, %v1483_v41 }
 0xbc5   :  { %v1153_v8 = vadd.f32 %v1144_v6, %v977_v61  ;;  %v1287_v6 = vrot.slane %v2143_v0, %v2018_v3 }
 0xbc6   :  { %v1158_v9 = vsel %vm24_vm0, %v1154_v5, 0.0  ;;  %v1162_v10 = vmul.f32 %v1154_v5, %v1154_v5  ;;  %1790 = vmatprep.subr.bf16.mxu1 %v1789_v39 }
 0xbc7   :  { %1159 = vadd.xlane.f32.xlu1 %v1158_v9  ;;  %v1155_v38 = vsel %vm24_vm0, %v1153_v8, 0.0  ;;  %v1161_v11 = vmul.f32 %v1153_v8, %v1153_v8  ;;  %1792 = vmatpush3.bf16.msra.mxu1 %v1789_v39 }
 0xbc8   :  { %1156 = vadd.xlane.f32.xlu0 %v1155_v38  ;;  %v1166_v12 = vsel %vm24_vm0, %v1162_v10, 0.0 }
 0xbc9   :  { %v1163_v13 = vsel %vm24_vm0, %v1161_v11, 0.0 }
 0xbcb   :  { %1167 = vadd.xlane.f32.xlu1 %v1166_v12 }
 0xbcc   :  { %1164 = vadd.xlane.f32.xlu0 %v1163_v13 }
 0xc54   :  { %v1160_v28 = vpop.xlane.xlu1 %1159 }
 0xc55   :  { %v1170_v30 = vmul.f32 0.03125, %v1160_v28  ;;  %v1157_v31 = vpop.xlane.xlu0 %1156 }
 0xc56   :  { %v1169_v33 = vmul.f32 0.03125, %v1157_v31 }
 0xc57   :  { %v1174_v35 = vmul.f32 %v1170_v30, %v1170_v30  ;;  %v1178_v50 = vsub.f32 %v1154_v5, %v1170_v30 }
 0xc58   :  { %v1168_v34 = vpop.xlane.xlu1 %1167  ;;  %v1173_v40 = vmul.f32 %v1169_v33, %v1169_v33  ;;  %v1177_v53 = vsub.f32 %v1153_v8, %v1169_v33  ;;  %v1404_v33 = vrot.slane %v2143_v0, %v2040_v46 }
 0xc59   :  { %v1172_v36 = vmul.f32 0.03125, %v1168_v34  ;;  %v1165_v37 = vpop.xlane.xlu0 %1164 }
 0xc5a   :  { %v1171_v43 = vmul.f32 0.03125, %v1165_v37 }
 0xc5b   :  { %v1176_v44 = vsub.f32 %v1172_v36, %v1174_v35 }
 0xc5c   :  { %v1175_v7 = vsub.f32 %v1171_v43, %v1173_v40  ;;  %v1410_v40 = vrot.slane %v2143_v0, %v2043_v47 }
 0xc5d   :  { %v1180_v48 = vadd.f32 1e-05, %v1176_v44 }
 0xc5e   :  { %v1179_v49 = vadd.f32 1e-05, %v1175_v7 }
 0xc5f   :  { %1819 = vrsqrt.f32 %v1180_v48 }
 0xc60   :  { %1821 = vrsqrt.f32 %v1179_v49 }
 0xc69   :  { %v1820_v52 = vpop.eup %1819 }
 0xc6a   :  { %v1822_v54 = vpop.eup %1821  ;;  %v1184_v55 = vmul.f32 %v1820_v52, %v1178_v50 }
 0xc6b   :  { %v1183_v56 = vmul.f32 %v1822_v54, %v1177_v53 }
 0xc6c   :  { %v1190_v58 = vmul.f32 %v1188_v51, %v1184_v55 }
 0xc6d   :  { %v1189_v60 = vmul.f32 %v1188_v51, %v1183_v56 }
 0xc6e   :  { %v1196_v62 = vadd.f32 %v1194_v57, %v1190_v58 }
 0xc6f   :  { %v1195_v61 = vadd.f32 %v1194_v57, %v1189_v60 }
 0xc71   :  { %1681 = vmatprep.mubr.msk.f32.mxu0 %vm24_vm0, %v1195_v61 }
 0xc72   :  { %1682 = vmatmul.mubr.msk.f32.vlgmr.msra.gmra.mrb[8].mxu0 %vm24_vm0, %v1196_v62 }
 0xd45   :  { %v1683_v29 = vpop.f32.mrb[8].mxu0 }
 0xd46   :  { %v1279_v1 = vadd.f32 %v1683_v29, %v1200_v42  ;;  %v1273_v2 = vpop.f32.mrb[9].mxu0 }
 0xd47   :  { %v1274_v4 = vadd.f32 %v1273_v2, %v1200_v42 }
 0xd48   :  { %v1283_v5 = vmax.f32 %v1279_v1, 0.0 }
 0xd49   :  { %v1282_v32 = vmax.f32 %v1274_v4, 0.0 }
 0xd4b   :  { %1700 = vmatprep.mubr.msk.f32.mxu1 %vm419_vm6, %v1282_v32 }
 0xd4c   :  { %1701 = vmatmul.mubr.msk.f32.vlgmr.msra.gmra.mrb[12].mxu1 %vm419_vm6, %v1283_v5 }
 0xe1f   :  { %v1702_v8 = vpop.f32.mrb[12].mxu1 }
 0xe20   :  { %v1366_v9 = vadd.f32 %v1702_v8, %v1287_v6  ;;  %v1360_v10 = vpop.f32.mrb[13].mxu1 }
 0xe21   :  { %v1361_v38 = vadd.f32 %v1360_v10, %v1287_v6 }
 0xe22   :  { %v1370_v11 = vadd.f32 %v1366_v9, %v1196_v62 }
 0xe23   :  { %v1369_v12 = vadd.f32 %v1361_v38, %v1195_v61 }
 0xe24   :  { %v1374_v59 = vsel %vm24_vm0, %v1370_v11, 0.0  ;;  %v1378_v13 = vmul.f32 %v1370_v11, %v1370_v11 }
 0xe25   :  { %1375 = vadd.xlane.f32.xlu1 %v1374_v59  ;;  %v1371_v45 = vsel %vm24_vm0, %v1369_v12, 0.0  ;;  %v1377_v14 = vmul.f32 %v1369_v12, %v1369_v12 }
 0xe26   :  { %1372 = vadd.xlane.f32.xlu0 %v1371_v45  ;;  %v1382_v15 = vsel %vm24_vm0, %v1378_v13, 0.0 }
 0xe27   :  { %v1379_v16 = vsel %vm24_vm0, %v1377_v14, 0.0 }
 0xe29   :  { %1383 = vadd.xlane.f32.xlu1 %v1382_v15 }
 0xe2a   :  { %1380 = vadd.xlane.f32.xlu0 %v1379_v16 }
 0xeb2   :  { %v1376_v3 = vpop.xlane.xlu1 %1375 }
 0xeb3   :  { %v1386_v17 = vmul.f32 0.03125, %v1376_v3  ;;  %v1373_v18 = vpop.xlane.xlu0 %1372 }
 0xeb4   :  { %v1385_v19 = vmul.f32 0.03125, %v1373_v18 }
 0xeb5   :  { %v1390_v21 = vmul.f32 %v1386_v17, %v1386_v17  ;;  %v1394_v31 = vsub.f32 %v1370_v11, %v1386_v17 }
 0xeb6   :  { %v1384_v20 = vpop.xlane.xlu1 %1383  ;;  %v1389_v24 = vmul.f32 %v1385_v19, %v1385_v19  ;;  %v1393_v35 = vsub.f32 %v1369_v12, %v1385_v19 }
 0xeb7   :  { %v1388_v22 = vmul.f32 0.03125, %v1384_v20  ;;  %v1381_v23 = vpop.xlane.xlu0 %1380 }
 0xeb8   :  { %v1387_v25 = vmul.f32 0.03125, %v1381_v23 }
 0xeb9   :  { %v1392_v26 = vsub.f32 %v1388_v22, %v1390_v21 }
 0xeba   :  { %v1391_v27 = vsub.f32 %v1387_v25, %v1389_v24 }
 0xebb   :  { %v1396_v28 = vadd.f32 1e-05, %v1392_v26 }
 0xebc   :  { %v1395_v30 = vadd.f32 1e-05, %v1391_v27 }
 0xebd   :  { %1823 = vrsqrt.f32 %v1396_v28 }
 0xebe   :  { %1825 = vrsqrt.f32 %v1395_v30 }
 0xec7   :  { %v1824_v34 = vpop.eup %1823 }
 0xec8   :  { %v1826_v36 = vpop.eup %1825  ;;  %v1400_v37 = vmul.f32 %v1824_v34, %v1394_v31 }
 0xec9   :  { %v1399_v43 = vmul.f32 %v1826_v36, %v1393_v35 }
 0xeca   :  { %v1406_v44 = vmul.f32 %v1404_v33, %v1400_v37 }
 0xecb   :  { %v1405_v7 = vmul.f32 %v1404_v33, %v1399_v43 }
 0xecc   :  { %v1412_v48 = vadd.f32 %v1410_v40, %v1406_v44 }
 0xecd   :  { %v1411_v49 = vadd.f32 %v1410_v40, %v1405_v7 }
 0xece   :  { %1414 = vst.msk [vmem:[#allocation2 + $0x8] sm:$0xff] %vm24_vm0, %v1412_v48 }
 0xecf   :  { %1413 = vst.msk [vmem:[#allocation2] sm:$0xff] %vm24_vm0, %v1411_v49 }
 0xed0   :  { %1838 = shalt.err (!%p1835_p4)
}
 0xed1   :  { %s1839_s20 = scalar_lea.hbm %s2229_s4, 256 }
 0xed2   :  { %p1840_p5 = scmp.ne.s32.totalorder %s2229_s4, %s1839_s20  ;;  %p1843_p6 = scmp.lt.u32.totalorder %s1839_s20, %s2229_s4 }
 0xed4   :  { %p1845_p7 = pnand %p1843_p6, %p1840_p5 }
 0xed6   :  { %1848 = shalt.err (!%p1845_p7)
}
 0xed7   :  { %s1855_s24 = smov 128   ;;  %s1856_s25 = smov 8  }
 0xed8   :  { %1426 = dma.vmem_to_hbm [thread:$0]  %s1421_s16, 256, %s2229_s4, [#allocation3], %s1855_s24, %s1855_s24, %s1856_s25  }
 0xed9   :  { %1849 = dma.done.wait [#allocation3], 256  }
 0xeda   :  { %1850 = vsyncadd [#allocation3], 4294967040 }
 0xedb   :  { %1430 = vsyncpa [#allocation3], 1 }

</bundles_post_ra>
